<compile_context>
chip_gen: v5e
topology: v5e:2x2
jax: 0.10.0
libtpu: 0.0.40
codegen_flags: <defaults>
</compile_context>

<pallas_src>
import functools
import math

import jax
import jax.numpy as jnp
from jax.experimental import pallas as pl
from jax.experimental.pallas import tpu as pltpu


# --------------------------------------------------------------------------- #
# helpers
# --------------------------------------------------------------------------- #
def _round_up(x, m):
    return ((x + m - 1) // m) * m


def _pad_to(a, shape):
    pads = [(0, t - s) for s, t in zip(a.shape, shape)]
    if not any(p[1] for p in pads):
        return a
    return jnp.pad(a, pads)


def _vmem_limit_bytes():
    # Stay well under the physical VMEM of the current generation
    # (v5e/v6e: 128 MiB, v7x: 64 MiB per TensorCore).
    try:
        cap = int(pltpu.get_tpu_info().vmem_capacity_bytes)
    except Exception:
        cap = 64 * 1024 * 1024
    return int(min(cap * 3 // 4, 96 * 1024 * 1024))


def _choose_tile(dim, preferred):
    """Use the full dim when small (block == full array dim is always legal),
    otherwise the hardware-aligned preferred tile (multiple of 256/128/8)."""
    return dim if dim <= preferred else preferred


_SQRT1_2 = 1.0 / math.sqrt(2.0)


def _erf(x):
    # Abramowitz & Stegun 7.1.26; the divide uses the EUP approximate
    # reciprocal (separate VLIW slot -> keeps the polynomial off the VALU).
    a1, a2, a3, a4, a5 = 0.254829592, -0.284496736, 1.421413741, -1.453152027, 1.061405429
    p = 0.3275911
    s = jnp.sign(x)
    ax = jnp.abs(x)
    t = pl.reciprocal(1.0 + p * ax, approx=True)
    poly = ((((a5 * t + a4) * t + a3) * t + a2) * t + a1) * t
    return s * (1.0 - poly * jnp.exp(-ax * ax))


def _gelu_exact(x):
    # matches torch.nn.GELU() default (erf formulation)
    return 0.5 * x * (1.0 + _erf(x * _SQRT1_2))


# --------------------------------------------------------------------------- #
# Kernel 1: router logits -> masked softmax + cross-tile expert-load sum
# --------------------------------------------------------------------------- #
def router_kernel(x_ref, wr_ref, rw_ref, load_ref, *, num_experts, num_tokens, token_tile):
    # Lane-dense (TN, E_pad) logits; padded expert lanes masked out.
    logits = jnp.dot(x_ref[...], wr_ref[...], preferred_element_type=jnp.float32)
    lane = jax.lax.broadcasted_iota(jnp.int32, logits.shape, 1)
    logits = jnp.where(lane < num_experts, logits, -1e30)

    m = jnp.max(logits, axis=-1, keepdims=True)
    ex = jnp.exp(logits - m)
    rw = ex / jnp.sum(ex, axis=-1, keepdims=True)
    rw_ref[...] = rw

    # expert load: exclude padded token rows, accumulate sum across N tiles.
    row = pl.program_id(0) * token_tile + jax.lax.broadcasted_iota(jnp.int32, rw.shape, 0)
    rw_valid = jnp.where(row < num_tokens, rw, 0.0)

    @pl.when(pl.program_id(0) == 0)
    def _init():
        load_ref[...] = jnp.zeros_like(load_ref)

    load_ref[...] += jnp.sum(rw_valid, axis=0, keepdims=True)


def router_softmax(x, router_w, *, token_tile):
    N, H = x.shape
    E = router_w.shape[1]
    tn = token_tile
    n_pad = _round_up(N, tn)
    e_pad = _round_up(E, 128)

    x_p = _pad_to(x, (n_pad, H))
    wr_p = _pad_to(router_w.astype(jnp.float32), (H, e_pad))

    kernel = functools.partial(router_kernel, num_experts=E, num_tokens=N,
                               token_tile=tn)

    rw_pad, load_sum = pl.pallas_call(
        kernel,
        out_shape=(
            jax.ShapeDtypeStruct((n_pad, e_pad), jnp.float32),
            jax.ShapeDtypeStruct((1, e_pad), jnp.float32),
        ),
        grid=(n_pad // tn,),
        in_specs=[
            pl.BlockSpec((tn, H), lambda i: (i, 0)),
            pl.BlockSpec((H, e_pad), lambda i: (0, 0)),      # resident
        ],
        out_specs=(
            pl.BlockSpec((tn, e_pad), lambda i: (i, 0)),
            pl.BlockSpec((1, e_pad), lambda i: (0, 0)),      # resident accumulator
        ),
        compiler_params=pltpu.CompilerParams(
            dimension_semantics=("arbitrary",),
            vmem_limit_bytes=_vmem_limit_bytes(),
        ),
    )(x_p, wr_p)

    routing_weights = rw_pad[:N, :E]
    expert_load = load_sum[0, :E] / float(N)
    return routing_weights, expert_load


# --------------------------------------------------------------------------- #
# Kernel 2: tiled per-expert MLP (Linear -> exact GELU -> Linear) + combine
# --------------------------------------------------------------------------- #
def expert_mlp_kernel(counts_ref, x_ref, w1_ref, b1_ref, w2_ref, b2_ref, cw_ref,
                      o_ref, acc_ref):
    n = pl.program_id(0)
    e = pl.program_id(1)
    i = pl.program_id(2)
    num_e = pl.num_programs(1)
    num_i = pl.num_programs(2)

    @pl.when(jnp.logical_and(e == 0, i == 0))
    def _init():
        acc_ref[...] = jnp.zeros_like(acc_ref)

    # Skip (token tile, expert) pairs with no routed tokens.
    @pl.when(counts_ref[n * num_e + e] > 0)
    def _compute():
        # Per-token combine weight for expert e (lane select from resident (TN, E)).
        cw = cw_ref[...]
        lane = jax.lax.broadcasted_iota(jnp.int32, cw.shape, 1)
        w_e = jnp.sum(jnp.where(lane == e, cw, 0.0), axis=1, keepdims=True)   # (TN, 1) f32

        h = jnp.dot(x_ref[...], w1_ref[...],
                    preferred_element_type=jnp.float32) + b1_ref[...]
        h = _gelu_exact(h)                                                    # f32
        y = jnp.dot(h.astype(w2_ref.dtype), w2_ref[...],
                    preferred_element_type=jnp.float32)
        # Output bias is added only once per expert (first I tile).
        bias_scale = jnp.where(i == 0, 1.0, 0.0)
        acc_ref[...] += w_e * (y + bias_scale * b2_ref[...])

    @pl.when(jnp.logical_and(e == num_e - 1, i == num_i - 1))
    def _store():
        o_ref[...] = acc_ref[...].astype(o_ref.dtype)


def moe_expert_combine(x_bf16, w1, b1, w2, b2, combine, counts, *, token_tile, inter_tile):
    n_pad, H = x_bf16.shape
    E = w1.shape[0]
    i_pad = w1.shape[2]
    tn, ti = token_tile, inter_tile

    grid_spec = pltpu.PrefetchScalarGridSpec(
        num_scalar_prefetch=1,
        grid=(n_pad // tn, E, i_pad // ti),
        in_specs=[
            pl.BlockSpec((tn, H), lambda n, e, i, cnt: (n, 0)),            # x (resident per n)
            pl.BlockSpec((None, H, ti), lambda n, e, i, cnt: (e, 0, i)),   # W1 tile
            pl.BlockSpec((None, 1, ti), lambda n, e, i, cnt: (e, 0, i)),   # b1 tile
            pl.BlockSpec((None, ti, H), lambda n, e, i, cnt: (e, i, 0)),   # W2 tile
            pl.BlockSpec((None, 1, H), lambda n, e, i, cnt: (e, 0, 0)),    # b2
            pl.BlockSpec((tn, E), lambda n, e, i, cnt: (n, 0)),            # combine (resident per n)
        ],
        out_specs=pl.BlockSpec((tn, H), lambda n, e, i, cnt: (n, 0)),
        scratch_shapes=[pltpu.VMEM((tn, H), jnp.float32)],                 # f32 accumulator
    )

    return pl.pallas_call(
        expert_mlp_kernel,
        grid_spec=grid_spec,
        out_shape=jax.ShapeDtypeStruct((n_pad, H), jnp.float32),
        compiler_params=pltpu.CompilerParams(
            dimension_semantics=("parallel", "arbitrary", "arbitrary"),
            vmem_limit_bytes=_vmem_limit_bytes(),
        ),
    )(counts, x_bf16, w1, b1, w2, b2, combine)


# --------------------------------------------------------------------------- #
# Full MoE forward (glue: reshapes, top-k on E experts, loss on E values)
# --------------------------------------------------------------------------- #
def moe_forward(hidden_states, params, num_experts_per_tok=2, router_z_loss_coef=1e-3,
                token_tile=None, inter_tile=None):
    B, S, H = hidden_states.shape
    N = B * S
    E, _, I = params["w1"].shape

    # Tile selection (256/512 defaults for v6e/v7x; shrink-to-fit for small shapes).
    tn = token_tile if token_tile is not None else _choose_tile(N, 256)
    ti = inter_tile if inter_tile is not None else _choose_tile(I, 512)
    n_pad = _round_up(N, tn)
    i_pad = _round_up(I, ti)

    x = hidden_states.reshape(N, H).astype(jnp.float32)

    # --- routing (Pallas kernel #1, f32 for routing fidelity) ----------------
    routing_weights, expert_load = router_softmax(x, params["router_w"], token_tile=tn)

    # --- top-k + renormalize + dense combine weights (tiny glue) -------------
    topk_vals, topk_idx = jax.lax.top_k(routing_weights, num_experts_per_tok)
    topk_norm = topk_vals / jnp.sum(topk_vals, axis=-1, keepdims=True)
    onehot = jax.nn.one_hot(topk_idx, E, dtype=jnp.float32)                  # (N, k, E)
    combine = jnp.sum(topk_norm[..., None] * onehot, axis=1)                 # (N, E)

    # per-(token tile, expert) routed counts -> flat SMEM scalar-prefetch array
    routed = (jnp.sum(onehot, axis=1) > 0).astype(jnp.int32)                 # (N, E)
    routed_p = _pad_to(routed, (n_pad, E))
    counts = jnp.sum(routed_p.reshape(n_pad // tn, tn, E), axis=1)
    counts = counts.reshape(-1).astype(jnp.int32)                            # (T*E,)

    # --- expert MLPs + weighted combine (Pallas kernel #2, hot path) ---------
    x_bf16 = _pad_to(x, (n_pad, H)).astype(jnp.bfloat16)
    combine_p = _pad_to(combine, (n_pad, E))
    w1 = _pad_to(params["w1"], (E, H, i_pad))                                # bf16
    w2 = _pad_to(params["w2"], (E, i_pad, H))                                # bf16
    b1 = _pad_to(params["b1"], (E, i_pad))[:, None, :].astype(jnp.float32)   # (E,1,I_pad)
    b2 = params["b2"][:, None, :].astype(jnp.float32)                        # (E,1,H)

    out = moe_expert_combine(x_bf16, w1, b1, w2, b2, combine_p, counts,
                             token_tile=tn, inter_tile=ti)
    out = out[:N].reshape(B, S, H)

    # --- load-balancing loss (E-sized glue) ----------------------------------
    target_load = 1.0 / E
    load_balancing_loss = jnp.mean((expert_load - target_load) ** 2) * router_z_loss_coef

    return out, {"load_balancing_loss": load_balancing_loss}


# --------------------------------------------------------------------------- #
# Deterministic parameter construction (pre-transposed, MXU-friendly dtypes)
# --------------------------------------------------------------------------- #
def init_params(key, hidden_size, intermediate_size, num_experts):
    H, I, E = hidden_size, intermediate_size, num_experts
    k = jax.random.split(key, 5)
    return {
        "router_w": jax.random.normal(k[0], (H, E), jnp.float32) / math.sqrt(H),
        "w1": (jax.random.normal(k[1], (E, H, I), jnp.float32) / math.sqrt(H)).astype(jnp.bfloat16),
        "b1": jax.random.normal(k[2], (E, I), jnp.float32) * 0.01,
        "w2": (jax.random.normal(k[3], (E, I, H), jnp.float32) / math.sqrt(I)).astype(jnp.bfloat16),
        "b2": jax.random.normal(k[4], (E, H), jnp.float32) * 0.01,
    }


# Pure-JAX f32 reference of the same (eval-mode, intended) semantics.
def _reference_forward(hidden_states, params, num_experts_per_tok, router_z_loss_coef=1e-3):
    B, S, H = hidden_states.shape
    E, _, I = params["w1"].shape
    x = hidden_states.reshape(-1, H).astype(jnp.float32)
    hi = jax.lax.Precision.HIGHEST
    logits = jnp.dot(x, params["router_w"].astype(jnp.float32), precision=hi)
    rw = jax.nn.softmax(logits, axis=-1)
    tv, ti = jax.lax.top_k(rw, num_experts_per_tok)
    tv = tv / jnp.sum(tv, axis=-1, keepdims=True)
    comb = jnp.sum(tv[..., None] * jax.nn.one_hot(ti, E, dtype=jnp.float32), axis=1)
    out = jnp.zeros_like(x)
    for e in range(E):
        h = jnp.dot(x, params["w1"][e].astype(jnp.float32), precision=hi) + params["b1"][e]
        h = jax.nn.gelu(h, approximate=False)
        y = jnp.dot(h, params["w2"][e].astype(jnp.float32), precision=hi) + params["b2"][e]
        out = out + comb[:, e:e + 1] * y
    load = jnp.mean(rw, axis=0)
    loss = jnp.mean((load - 1.0 / E) ** 2) * router_z_loss_coef
    return out.reshape(B, S, H), loss


if __name__ == "__main__":
    B, S, H, I, E, K = 2, 8, 32, 256, 8, 2

    root = jax.random.PRNGKey(0)
    pkey, xkey = jax.random.split(root)
    params = init_params(pkey, H, I, E)
    hidden_states = jax.random.normal(xkey, (B, S, H), jnp.float32)

    # 1) auto tile selection (single tile at these small shapes)
    out, aux = moe_forward(hidden_states, params, num_experts_per_tok=K)
    out = jax.block_until_ready(out)
    aux = jax.block_until_ready(aux)

    # 2) forced multi-tile path (2 token tiles x 2 intermediate tiles) to
    #    exercise the accumulator / bias-once / count-skip logic.
    out_t, aux_t = moe_forward(hidden_states, params, num_experts_per_tok=K,
                               token_tile=8, inter_tile=128)
    out_t = jax.block_until_ready(out_t)

    ref_out, ref_loss = _reference_forward(hidden_states, params, K)

    assert out.shape == (B, S, H)
    assert aux["load_balancing_loss"].shape == ()
    assert jnp.allclose(out, ref_out, atol=5e-2, rtol=5e-2), "single-tile output mismatch"
    assert jnp.allclose(out_t, ref_out, atol=5e-2, rtol=5e-2), "multi-tile output mismatch"
    assert jnp.allclose(aux["load_balancing_loss"], ref_loss, atol=1e-7)
    assert jnp.allclose(aux_t["load_balancing_loss"], ref_loss, atol=1e-7)
    print("KERNEL_OK")
</pallas_src>

<mosaic_0001>
module attributes {stable_mosaic.version = 11 : i64} {
  func.func @router_kernel(%arg0: i32, %arg1: memref<16x32xf32, #tpu.memory_space<vmem>>, %arg2: memref<32x128xf32, #tpu.memory_space<vmem>>, %arg3: memref<16x128xf32, #tpu.memory_space<vmem>>, %arg4: memref<1x128xf32, #tpu.memory_space<vmem>>) attributes {dimension_semantics = [#tpu.dimension_semantics<arbitrary>], iteration_bounds = array<i64: 1>, scalar_prefetch = 0 : i64, scratch_operands = 0 : i64, tpu.core_type = #tpu.core_type<tc>, window_params = [{transform_indices = @transform_0, window_bounds = array<i64: 16, 32>}, {pipeline_mode = #tpu.pipeline_mode<synchronous>, transform_indices = @transform_1, window_bounds = array<i64: 32, 128>}, {transform_indices = @transform_2, window_bounds = array<i64: 16, 128>}, {pipeline_mode = #tpu.pipeline_mode<synchronous>, transform_indices = @transform_3, window_bounds = array<i64: 1, 128>}]} {
    %c0 = arith.constant 0 : index
    %c0_0 = arith.constant 0 : index
    %0 = vector.load %arg1[%c0, %c0_0] : memref<16x32xf32, #tpu.memory_space<vmem>>, vector<16x32xf32>
    %c0_1 = arith.constant 0 : index
    %c0_2 = arith.constant 0 : index
    %1 = vector.load %arg2[%c0_1, %c0_2] : memref<32x128xf32, #tpu.memory_space<vmem>>, vector<32x128xf32>
    %cst = arith.constant dense<0.000000e+00> : vector<16x128xf32>
    %2 = tpu.matmul %0, %1, %cst {dimension_numbers = #tpu.dot_dimension_numbers<[1], [0], [0], [1], [0, 0, 1, 1], [], []>} : vector<16x32xf32>, vector<32x128xf32>, vector<16x128xf32> -> vector<16x128xf32>
    %3 = tpu.iota {dimensions = array<i32: 1>} : vector<16x128xi32>
    %c8_i32 = arith.constant 8 : i32
    %4 = vector.broadcast %c8_i32 : i32 to vector<16x128xi32>
    %5 = arith.cmpi slt, %3, %4 : vector<16x128xi32>
    %cst_3 = arith.constant -1.000000e+30 : f32
    %6 = vector.broadcast %cst_3 : f32 to vector<16x128xf32>
    %7 = arith.select %5, %2, %6 : vector<16x128xi1>, vector<16x128xf32>
    %cst_4 = arith.constant dense<0xFF800000> : vector<16xf32>
    %8 = vector.multi_reduction <maximumf>, %7, %cst_4 [1] : vector<16x128xf32> to vector<16xf32>
    %9 = vector.shape_cast %8 : vector<16xf32> to vector<16x1xf32>
    %10 = vector.broadcast %9 : vector<16x1xf32> to vector<16x128xf32>
    %11 = arith.subf %7, %10 : vector<16x128xf32>
    %12 = math.exp %11 : vector<16x128xf32>
    %cst_5 = arith.constant dense<0.000000e+00> : vector<16xf32>
    %13 = vector.multi_reduction <add>, %12, %cst_5 [1] : vector<16x128xf32> to vector<16xf32>
    %14 = vector.shape_cast %13 : vector<16xf32> to vector<16x1xf32>
    %15 = vector.broadcast %14 : vector<16x1xf32> to vector<16x128xf32>
    %16 = arith.divf %12, %15 : vector<16x128xf32>
    %c0_6 = arith.constant 0 : index
    %c0_7 = arith.constant 0 : index
    %17 = vector.load %arg3[%c0_6, %c0_7] : memref<16x128xf32, #tpu.memory_space<vmem>>, vector<16x128xf32>
    tpu.vector_store %arg3[%c0_6, %c0_7], %16 {strides = array<i32>} : memref<16x128xf32, #tpu.memory_space<vmem>>, vector<16x128xf32>,
    %c16_i32 = arith.constant 16 : i32
    %18 = arith.muli %arg0, %c16_i32 : i32
    %19 = tpu.iota {dimensions = array<i32: 0>} : vector<16x128xi32>
    %20 = vector.broadcast %18 : i32 to vector<16x128xi32>
    %21 = arith.addi %20, %19 : vector<16x128xi32>
    %c16_i32_8 = arith.constant 16 : i32
    %22 = vector.broadcast %c16_i32_8 : i32 to vector<16x128xi32>
    %23 = arith.cmpi slt, %21, %22 : vector<16x128xi32>
    %cst_9 = arith.constant 0.000000e+00 : f32
    %24 = vector.broadcast %cst_9 : f32 to vector<16x128xf32>
    %25 = arith.select %23, %16, %24 : vector<16x128xi1>, vector<16x128xf32>
    %c0_i32 = arith.constant 0 : i32
    %26 = arith.cmpi eq, %arg0, %c0_i32 : i32
    %27 = arith.extui %26 : i1 to i32
    %c0_i32_10 = arith.constant 0 : i32
    %28 = arith.cmpi ne, %27, %c0_i32_10 : i32
    scf.if %28 {
      %cst_16 = arith.constant 0.000000e+00 : f32
      %34 = vector.broadcast %cst_16 : f32 to vector<1x128xf32>
      %c0_17 = arith.constant 0 : index
      %c0_18 = arith.constant 0 : index
      %35 = vector.load %arg4[%c0_17, %c0_18] : memref<1x128xf32, #tpu.memory_space<vmem>>, vector<1x128xf32>
      tpu.vector_store %arg4[%c0_17, %c0_18], %34 {strides = array<i32>} : memref<1x128xf32, #tpu.memory_space<vmem>>, vector<1x128xf32>,
    } else {
    }
    %c0_11 = arith.constant 0 : index
    %c0_12 = arith.constant 0 : index
    %29 = vector.load %arg4[%c0_11, %c0_12] : memref<1x128xf32, #tpu.memory_space<vmem>>, vector<1x128xf32>
    %cst_13 = arith.constant dense<0.000000e+00> : vector<128xf32>
    %30 = vector.multi_reduction <add>, %25, %cst_13 [0] : vector<16x128xf32> to vector<128xf32>
    %31 = vector.shape_cast %30 : vector<128xf32> to vector<1x128xf32>
    %32 = arith.addf %29, %31 : vector<1x128xf32>
    %c0_14 = arith.constant 0 : index
    %c0_15 = arith.constant 0 : index
    %33 = vector.load %arg4[%c0_14, %c0_15] : memref<1x128xf32, #tpu.memory_space<vmem>>, vector<1x128xf32>
    tpu.vector_store %arg4[%c0_14, %c0_15], %32 {strides = array<i32>} : memref<1x128xf32, #tpu.memory_space<vmem>>, vector<1x128xf32>,
    return
  }
  func.func @transform_0(%arg0: i32) -> (i32, i32) {
    %c0_i32 = arith.constant 0 : i32
    %c0_i32_0 = arith.constant 0 : i32
    return %arg0, %c0_i32 : i32, i32
  }
  func.func @transform_1(%arg0: i32) -> (i32, i32) {
    %c0_i32 = arith.constant 0 : i32
    %c0_i32_0 = arith.constant 0 : i32
    %c0_i32_1 = arith.constant 0 : i32
    return %c0_i32, %c0_i32_0 : i32, i32
  }
  func.func @transform_2(%arg0: i32) -> (i32, i32) {
    %c0_i32 = arith.constant 0 : i32
    %c0_i32_0 = arith.constant 0 : i32
    return %arg0, %c0_i32 : i32, i32
  }
  func.func @transform_3(%arg0: i32) -> (i32, i32) {
    %c0_i32 = arith.constant 0 : i32
    %c0_i32_0 = arith.constant 0 : i32
    %c0_i32_1 = arith.constant 0 : i32
    return %c0_i32, %c0_i32_0 : i32, i32
  }
}

</mosaic_0001>

<bundles_post_ra>
// kernel: tpu_custom_call.1
= control target key start
LH: loop header
LB: loop body
LE: loop exit
PB: predicated region body
PF: predicated region fallthrough
CT: control target
= control target key end

     0   :  { %9 = vsyncpa [#allocation3], 0  ;;  %s369_s0 = inlined_call_operand.hbm [shape: f32[16,32], index: 0, kind: input, shape index: {}]   ;;  %s370_s1 = inlined_call_operand.hbm [shape: f32[32,128], index: 1, kind: input, shape index: {}]   ;;  %s371_s2 = inlined_call_operand.hbm [shape: f32[16,128], index: 2, kind: output, shape index: {0}]   ;;  %s372_s3 = inlined_call_operand.hbm [shape: f32[1,128], index: 3, kind: output, shape index: {1}]  }
   0x1   :  { %10 = vsyncpa [#allocation6], 0 }
   0x2   :  { %11 = vsyncpa [#allocation4], 0 }
   0x3   :  { %12 = vsyncpa [#allocation9], 0  ;;  %s17_s14 = sshll.u32 %s369_s0, 4  ;;  %s321_s15 = smov [#allocation2]   ;;  %s18_s14 = int_to_ptr.hbm [resolvable:$true] %s17_s14 }
   0x4   :  { %s19_s16 = sshll.u32 %s321_s15, 4  ;;  %s30_s19 = sshll.u32 %s370_s1, 4  ;;  %s20_s16 = int_to_ptr.vmem [resolvable:$true] %s19_s16  ;;  %s31_s19 = int_to_ptr.hbm [resolvable:$true] %s30_s19 }
   0x5   :  { %s322_s20 = smov 128   ;;  %s323_s21 = smov 8  }
   0x6   :  { %25 = dma.hbm_to_vmem [thread:$0]  %s18_s14, 256, %s20_s16, [#allocation3], %s322_s20, %s322_s20, %s323_s21  }
   0x7   :  { %s324_s22 = smov [#allocation5]  }
   0x8   :  { %s32_s23 = sshll.u32 %s324_s22, 4  ;;  %s33_s23 = int_to_ptr.vmem [resolvable:$true] %s32_s23 }
   0x9   :  { %38 = dma.hbm_to_vmem [thread:$0]  %s31_s19, 512, %s33_s23, [#allocation6], %s322_s20, %s322_s20, %s323_s21  }
   0xa   :  { %313 = dma.done.wait [#allocation3], 256  }
   0xb   :  { %314 = vsyncadd [#allocation3], 4294967040 }
   0xc   :  { %315 = dma.done.wait [#allocation6], 512  }
   0xd   :  { %316 = vsyncadd [#allocation6], 4294966784  ;;  %v52_v0 = vld [vmem:[#allocation5 + $0x18] sm:$0xff]  ;;  %v51_v1 = vld [vmem:[#allocation5 + $0x10] sm:$0xff]  ;;  %vm53_vm0 = vcmask 261120   ;;  %v83_v6 = vlaneseq  ;;  %v325_v21 = vmov 0.0  }
   0xe   :  { %72 = vmatpush.msra.mxu0 %v52_v0  ;;  %198 = vmatpush.msra.mxu1 %v52_v0  ;;  %v50_v2 = vld [vmem:[#allocation5 + $0x8] sm:$0xff]  ;;  %v49_v3 = vld [vmem:[#allocation5] sm:$0xff]  ;;  %v47_v4 = vld [vmem:[#allocation2] sm:$0xff]  ;;  %149 = vst [vmem:[#allocation8] sm:$0x1] %v325_v21  ;;  %s326_s0 = smov [#allocation7]  }
   0xf   :  { %v48_v5 = vld [vmem:[#allocation2 + $0x8] sm:$0xff]  ;;  %v84_v7 = vand.u32 127, %v83_v6  ;;  %s164_s1 = sshll.u32 %s326_s0, 4  ;;  %s166_s26 = sshll.u32 %s371_s2, 4  ;;  %s165_s1 = int_to_ptr.vmem [resolvable:$true] %s164_s1  ;;  %s167_s26 = int_to_ptr.hbm [resolvable:$true] %s166_s26 }
  0x10   :  { %73 = vmatpush.msra.mxu0 %v51_v1  ;;  %199 = vmatpush.msra.mxu1 %v51_v1  ;;  %s327_s27 = smov [#allocation8]   ;;  %s180_s30 = sshll.u32 %s372_s3, 4  ;;  %s181_s30 = int_to_ptr.hbm [resolvable:$true] %s180_s30 }
  0x11   :  { %vm85_vm1 = vcmp.lt.s32.totalorder %v84_v7, 8  ;;  %s178_s2 = sshll.u32 %s327_s27, 4  ;;  %s179_s2 = int_to_ptr.vmem [resolvable:$true] %s178_s2 }
  0x12   :  { %74 = vmatpush.msra.mxu0 %v50_v2  ;;  %200 = vmatpush.msra.mxu1 %v50_v2 }
  0x14   :  { %75 = vmatpush.msra.mxu0 %v49_v3  ;;  %201 = vmatpush.msra.mxu1 %v49_v3 }
  0x15   :  { %196 = vmatmul.msk.f32.vlgmr.msra.gmra.mxu0 %vm53_vm0, %v47_v4  ;;  %197 = vmatmul.msk.f32.vlgmr.msra.gmra.mxu1 %vm53_vm0, %v48_v5  ;;  %v150_v51 = vld [vmem:[#allocation8] sm:$0x1] }
  0x92   :  { %v77_v8 = vpop.f32.mrf.mxu0  ;;  %v80_v10 = vpop.f32.mrf.mxu1 }
  0x93   :  { %v86_v9 = vsel %vm85_vm1, %v77_v8, -1e+30  ;;  %v87_v11 = vsel %vm85_vm1, %v80_v10, -1e+30 }
  0x94   :  { %88 = vmax.xlane.f32.xlu0 %v86_v9 }
  0x9c   :  { %90 = vmax.xlane.f32.xlu0 %v87_v11 }
 0x107   :  { %v89_v12 = vpop.xlane.xlu0 %88 }
 0x108   :  { %v92_v13 = vsub.f32 %v86_v9, %v89_v12 }
 0x10a   :  { %v94_v14 = vmul.f32 1.442695, %v92_v13 }
 0x10c   :  { %209 = vpow2.f32 %v94_v14 }
 0x10f   :  { %v91_v15 = vpop.xlane.xlu0 %90 }
 0x110   :  { %v93_v16 = vsub.f32 %v87_v11, %v91_v15 }
 0x112   :  { %v210_v17 = vpop.eup %209  ;;  %v96_v18 = vmul.f32 1.442695, %v93_v16 }
 0x113   :  { %98 = vadd.xlane.f32.xlu1 %v210_v17 }
 0x114   :  { %211 = vpow2.f32 %v96_v18 }
 0x11a   :  { %v212_v19 = vpop.eup %211 }
 0x11b   :  { %100 = vadd.xlane.f32.xlu1 %v212_v19 }
 0x186   :  { %v99_v20 = vpop.xlane.xlu1 %98 }
 0x187   :  { %213 = vrcp.f32 %v99_v20  ;;  %v113_v26 = vand.u32 2147483648, %v99_v20  ;;  %v111_v28 = vand.u32 2147483647, %v99_v20  ;;  %vm107_vm3 = vweird.f32 %v99_v20 }
 0x189   :  { %v114_v31 = vor.u32 1.1754944e-38, %v113_v26  ;;  %vm112_vm5 = vcmp.eq.f32.partialorder %v111_v28, 8.507059e+37 }
 0x18d   :  { %v214_v22 = vpop.eup %213 }
 0x18e   :  { %v103_v23 = vmul.f32 %v214_v22, %v99_v20  ;;  %v101_v24 = vpop.xlane.xlu1 %100  ;;  %vm108_vm2 = vweird.f32 %v214_v22 }
 0x18f   :  { %215 = vrcp.f32 %v101_v24  ;;  %vm109_vm4 = vmor %vm107_vm3, %vm108_vm2  ;;  %v128_v37 = vand.u32 2147483648, %v101_v24  ;;  %v126_v39 = vand.u32 2147483647, %v101_v24  ;;  %vm122_vm7 = vweird.f32 %v101_v24 }
 0x190   :  { %v104_v25 = vsub.f32 1.0, %v103_v23 }
 0x191   :  { %v129_v41 = vor.u32 1.1754944e-38, %v128_v37  ;;  %vm127_vm9 = vcmp.eq.f32.partialorder %v126_v39, 8.507059e+37 }
 0x192   :  { %v105_v27 = vmul.f32 %v214_v22, %v104_v25 }
 0x194   :  { %v106_v29 = vadd.f32 %v214_v22, %v105_v27 }
 0x195   :  { %v216_v30 = vpop.eup %215 }
 0x196   :  { %v118_v32 = vmul.f32 %v216_v30, %v101_v24  ;;  %v110_v33 = vsel %vm109_vm4, %v214_v22, %v106_v29  ;;  %vm123_vm6 = vweird.f32 %v216_v30 }
 0x197   :  { %v115_v34 = vsel %vm112_vm5, %v114_v31, %v110_v33  ;;  %vm124_vm8 = vmor %vm122_vm7, %vm123_vm6 }
 0x198   :  { %v119_v35 = vsub.f32 1.0, %v118_v32  ;;  %v116_v36 = vmul.f32 %v210_v17, %v115_v34 }
 0x19a   :  { %v120_v38 = vmul.f32 %v216_v30, %v119_v35  ;;  %132 = vst [vmem:[#allocation7] sm:$0xff] %v116_v36 }
 0x19c   :  { %v121_v40 = vadd.f32 %v216_v30, %v120_v38 }
 0x19e   :  { %v125_v42 = vsel %vm124_vm8, %v216_v30, %v121_v40 }
 0x19f   :  { %v130_v43 = vsel %vm127_vm9, %v129_v41, %v125_v42 }
 0x1a0   :  { %v131_v44 = vmul.f32 %v212_v19, %v130_v43 }
 0x1a2   :  { %133 = vst [vmem:[#allocation7 + $0x8] sm:$0xff] %v131_v44  ;;  %v151_v45 = vadd.f32 %v131_v44, %v116_v36 }
 0x1a3   :  { %172 = dma.vmem_to_hbm [thread:$0]  %s165_s1, 256, %s167_s26, [#allocation4], %s322_s20, %s322_s20, %s323_s21  }
 0x1a4   :  { %v152_v46 = vrot.slane %v151_v45, 4 }
 0x1a6   :  { %v153_v47 = vadd.f32 %v152_v46, %v151_v45 }
 0x1a8   :  { %v154_v48 = vrot.slane %v153_v47, 2 }
 0x1aa   :  { %v155_v49 = vadd.f32 %v154_v48, %v153_v47 }
 0x1ac   :  { %v156_v50 = vrot.slane %v155_v49, 1 }
 0x1ae   :  { %v157_v52 = vadd.f32 %v156_v50, %v155_v49 }
 0x1b0   :  { %v158_v53 = vadd.f32 %v157_v52, %v150_v51 }
 0x1b2   :  { %159 = vst [vmem:[#allocation8] sm:$0x1] %v158_v53 }
 0x1b3   :  { %183 = dma.vmem_to_hbm [thread:$0]  %s179_s2, 16, %s181_s30, [#allocation9]  }
 0x1b4   :  { %317 = dma.done.wait [#allocation4], 256  }
 0x1b5   :  { %318 = vsyncadd [#allocation4], 4294967040 }
 0x1b6   :  { %319 = dma.done.wait [#allocation9], 16  }
 0x1b7   :  { %320 = vsyncadd [#allocation9], 4294967280 }
 0x1b8   :  { %192 = vsyncpa [#allocation3], 1 }
 0x1b9   :  { %193 = vsyncpa [#allocation6], 1 }
 0x1ba   :  { %194 = vsyncpa [#allocation4], 1 }
 0x1bb   :  { %195 = vsyncpa [#allocation9], 1 }

</bundles_post_ra>
